<compile_context>
chip_gen: v7x
topology: tpu7x:2x2x1
jax: 0.10.0
libtpu: 0.0.40
codegen_flags: <defaults>
</compile_context>

<pallas_src>
import functools

import jax
import jax.numpy as jnp
from jax.experimental import pallas as pl
from jax.experimental.pallas import tpu as pltpu


def _policy_kernel(x_ref, w1_ref, b1_ref, w2_ref, b2_ref, w3_ref, b3_ref,
                   o_ref, *, compute_dtype):
    # x_ref: (TB, S) f32 tile straight from HBM.  Transpose in-kernel (XLU) so
    # the batch dim sits on the lanes, then cast to the matmul dtype (VPU).
    xt = x_ref[...].T.astype(compute_dtype)                      # (S, TB)

    # Layer 1: (H, S) @ (S, TB) -> (H, TB); f32 accumulate, f32 epilogue.
    h1 = jnp.dot(w1_ref[...], xt, preferred_element_type=jnp.float32)
    h1 = jnp.maximum(h1 + b1_ref[...], 0.0)

    # Layer 2: (H, H) @ (H, TB) -> (H, TB).
    h2 = jnp.dot(w2_ref[...], h1.astype(compute_dtype),
                 preferred_element_type=jnp.float32)
    h2 = jnp.maximum(h2 + b2_ref[...], 0.0)

    # Output layer: (A, H) @ (H, TB) -> (A, TB); tanh (EUP) on lane-dense vregs.
    act = jnp.dot(w3_ref[...], h2.astype(compute_dtype),
                  preferred_element_type=jnp.float32)
    o_ref[...] = jnp.tanh(act + b3_ref[...]).astype(o_ref.dtype)


def _round_up(n, m):
    return ((n + m - 1) // m) * m


def _select_batch_tile(batch, block_batch):
    """Batch rows live on the lane axis -> tiles are multiples of 128 lanes."""
    if batch <= 256:
        return _round_up(max(batch, 1), 128)          # 128 or 256
    # Keep >= 2 grid steps so ("parallel",) can shard the batch across both
    # TensorCores on v7x; cap at block_batch (a multiple of 256).
    half = _round_up(pl.cdiv(batch, 2), 256)
    return int(min(block_batch, half))


def deterministic_policy_forward(x, w1, b1, w2, b2, w3, b3, *,
                                 block_batch=8192,
                                 compute_dtype=jnp.bfloat16,
                                 out_dtype=jnp.bfloat16):
    """tanh(relu(relu(x @ w1 + b1) @ w2 + b2) @ w3 + b3), fused on TPU."""
    B, S = x.shape
    H = w1.shape[1]
    A = w3.shape[1]

    # One-time (per policy) parameter prep: feature-major weights, column
    # biases so they broadcast along the lane (batch) axis; f32 bias epilogue.
    w1t = jnp.asarray(w1).T.astype(compute_dtype)                 # (H, S)
    w2t = jnp.asarray(w2).T.astype(compute_dtype)                 # (H, H)
    w3t = jnp.asarray(w3).T.astype(compute_dtype)                 # (A, H)
    b1c = jnp.asarray(b1, jnp.float32).reshape(H, 1)
    b2c = jnp.asarray(b2, jnp.float32).reshape(H, 1)
    b3c = jnp.asarray(b3, jnp.float32).reshape(A, 1)

    TB = _select_batch_tile(B, block_batch)
    grid = (pl.cdiv(B, TB),)          # partial last block is masked by Pallas

    def resident(arr):
        # Constant block index -> parameter stays VMEM-resident across steps.
        return pl.BlockSpec(arr.shape, lambda i: (0, 0))

    def isize(dt):
        return jnp.dtype(dt).itemsize

    cost = pl.CostEstimate(
        flops=2 * B * (S * H + H * H + H * A),
        transcendentals=B * A,
        bytes_accessed=(B * S * isize(x.dtype)                    # x stream
                        + B * A * isize(out_dtype)                # out stream
                        + (w1t.size + w2t.size + w3t.size) * isize(compute_dtype)
                        + (2 * H + A) * 4),                       # f32 biases
    )

    out_t = pl.pallas_call(
        functools.partial(_policy_kernel, compute_dtype=compute_dtype),
        out_shape=jax.ShapeDtypeStruct((A, B), out_dtype),        # feature-major
        grid=grid,
        in_specs=[
            pl.BlockSpec((TB, S), lambda i: (i, 0)),   # x: pipelined over batch
            resident(w1t), resident(b1c),
            resident(w2t), resident(b2c),
            resident(w3t), resident(b3c),
        ],
        out_specs=pl.BlockSpec((A, TB), lambda i: (0, i)),         # lane-dense
        compiler_params=pltpu.CompilerParams(
            # Batch axis is embarrassingly parallel -> megacore sharding on v7x.
            dimension_semantics=("parallel",),
        ),
        cost_estimate=cost,
    )(x, w1t, b1c, w2t, b2c, w3t, b3c)

    # (A, B) -> (B, A) fix-up: only B*A*itemsize bytes.
    return out_t.T


if __name__ == "__main__":
    # ARCHITECTURE = [state_dim, hidden, hidden, action_dim]
    STATE_DIM, HIDDEN, ACTION_DIM = 16, 32, 8
    BATCH = 2

    key = jax.random.PRNGKey(0)
    ks = jax.random.split(key, 8)

    def init_w(k, fan_in, fan_out):
        bound = 1.0 / jnp.sqrt(fan_in)
        return jax.random.uniform(k, (fan_in, fan_out), jnp.float32, -bound, bound)

    x = jax.random.normal(ks[0], (BATCH, STATE_DIM), dtype=jnp.float32)
    w1 = init_w(ks[1], STATE_DIM, HIDDEN)
    b1 = jax.random.uniform(ks[2], (HIDDEN,), jnp.float32, -0.1, 0.1)
    w2 = init_w(ks[3], HIDDEN, HIDDEN)
    b2 = jax.random.uniform(ks[4], (HIDDEN,), jnp.float32, -0.1, 0.1)
    w3 = init_w(ks[5], HIDDEN, ACTION_DIM)
    b3 = jax.random.uniform(ks[6], (ACTION_DIM,), jnp.float32, -0.1, 0.1)

    def ref_forward(xs):
        h1 = jnp.maximum(xs @ w1 + b1, 0.0)
        h2 = jnp.maximum(h1 @ w2 + b2, 0.0)
        return jnp.tanh(h2 @ w3 + b3)

    # ---- f32 path: structural correctness (layout / in-kernel transpose /
    #      partial-block masking).  Tolerance accommodates MXU precision modes.
    out_f32 = jax.block_until_ready(
        deterministic_policy_forward(x, w1, b1, w2, b2, w3, b3,
                                     compute_dtype=jnp.float32,
                                     out_dtype=jnp.float32))
    ref = ref_forward(x)
    assert out_f32.shape == (BATCH, ACTION_DIM)
    assert out_f32.dtype == jnp.float32
    assert jnp.allclose(out_f32, ref, atol=2e-2, rtol=2e-2), \
        float(jnp.max(jnp.abs(out_f32 - ref)))

    # ---- f32 path at a batch that is not a tile multiple (grid=2 with a
    #      partial final block) to verify the masked partial-block writeback.
    B2 = 300
    x2 = jax.random.normal(ks[7], (B2, STATE_DIM), dtype=jnp.float32)
    out2 = jax.block_until_ready(
        deterministic_policy_forward(x2, w1, b1, w2, b2, w3, b3,
                                     compute_dtype=jnp.float32,
                                     out_dtype=jnp.float32))
    ref2 = ref_forward(x2)
    assert out2.shape == (B2, ACTION_DIM)
    assert bool(jnp.all(jnp.isfinite(out2)))
    assert jnp.allclose(out2, ref2, atol=2e-2, rtol=2e-2), \
        float(jnp.max(jnp.abs(out2 - ref2)))

    # ---- default perf config: bf16 matmuls + bf16 output -------------------
    out_bf16 = jax.block_until_ready(
        deterministic_policy_forward(x, w1, b1, w2, b2, w3, b3))
    assert out_bf16.shape == (BATCH, ACTION_DIM)
    assert out_bf16.dtype == jnp.bfloat16
    diff = jnp.abs(out_bf16.astype(jnp.float32) - ref)
    assert jnp.allclose(out_bf16.astype(jnp.float32), ref, atol=5e-2, rtol=5e-2), \
        float(jnp.max(diff))

    print("KERNEL_OK")
</pallas_src>

<mosaic_0001>
module attributes {stable_mosaic.version = 11 : i64} {
  func.func @_policy_kernel(%arg0: i32, %arg1: memref<128x16xf32, #tpu.memory_space<vmem>>, %arg2: memref<32x16xf32, #tpu.memory_space<vmem>>, %arg3: memref<32x1xf32, #tpu.memory_space<vmem>>, %arg4: memref<32x32xf32, #tpu.memory_space<vmem>>, %arg5: memref<32x1xf32, #tpu.memory_space<vmem>>, %arg6: memref<8x32xf32, #tpu.memory_space<vmem>>, %arg7: memref<8x1xf32, #tpu.memory_space<vmem>>, %arg8: memref<8x128xf32, #tpu.memory_space<vmem>>) attributes {dimension_semantics = [#tpu.dimension_semantics<parallel>], iteration_bounds = array<i64: 1>, scalar_prefetch = 0 : i64, scratch_operands = 0 : i64, tpu.core_type = #tpu.core_type<tc>, window_params = [{transform_indices = @transform_0, window_bounds = array<i64: 128, 16>}, {pipeline_mode = #tpu.pipeline_mode<synchronous>, transform_indices = @transform_1, window_bounds = array<i64: 32, 16>}, {pipeline_mode = #tpu.pipeline_mode<synchronous>, transform_indices = @transform_2, window_bounds = array<i64: 32, 1>}, {pipeline_mode = #tpu.pipeline_mode<synchronous>, transform_indices = @transform_3, window_bounds = array<i64: 32, 32>}, {pipeline_mode = #tpu.pipeline_mode<synchronous>, transform_indices = @transform_4, window_bounds = array<i64: 32, 1>}, {pipeline_mode = #tpu.pipeline_mode<synchronous>, transform_indices = @transform_5, window_bounds = array<i64: 8, 32>}, {pipeline_mode = #tpu.pipeline_mode<synchronous>, transform_indices = @transform_6, window_bounds = array<i64: 8, 1>}, {transform_indices = @transform_7, window_bounds = array<i64: 8, 128>}]} {
    %c0 = arith.constant 0 : index
    %c0_0 = arith.constant 0 : index
    %0 = vector.load %arg1[%c0, %c0_0] : memref<128x16xf32, #tpu.memory_space<vmem>>, vector<128x16xf32>
    %1 = tpu.transpose %0, [1, 0] : vector<128x16xf32> -> vector<16x128xf32>
    %c0_1 = arith.constant 0 : index
    %c0_2 = arith.constant 0 : index
    %2 = vector.load %arg2[%c0_1, %c0_2] : memref<32x16xf32, #tpu.memory_space<vmem>>, vector<32x16xf32>
    %cst = arith.constant dense<0.000000e+00> : vector<32x128xf32>
    %3 = tpu.matmul %2, %1, %cst {dimension_numbers = #tpu.dot_dimension_numbers<[1], [0], [0], [1], [0, 0, 1, 1], [], []>} : vector<32x16xf32>, vector<16x128xf32>, vector<32x128xf32> -> vector<32x128xf32>
    %c0_3 = arith.constant 0 : index
    %c0_4 = arith.constant 0 : index
    %4 = vector.load %arg3[%c0_3, %c0_4] : memref<32x1xf32, #tpu.memory_space<vmem>>, vector<32x1xf32>
    %5 = vector.broadcast %4 : vector<32x1xf32> to vector<32x128xf32>
    %6 = arith.addf %3, %5 : vector<32x128xf32>
    %cst_5 = arith.constant 0.000000e+00 : f32
    %7 = vector.broadcast %cst_5 : f32 to vector<32x128xf32>
    %8 = arith.maximumf %6, %7 : vector<32x128xf32>
    %c0_6 = arith.constant 0 : index
    %c0_7 = arith.constant 0 : index
    %9 = vector.load %arg4[%c0_6, %c0_7] : memref<32x32xf32, #tpu.memory_space<vmem>>, vector<32x32xf32>
    %cst_8 = arith.constant dense<0.000000e+00> : vector<32x128xf32>
    %10 = tpu.matmul %9, %8, %cst_8 {dimension_numbers = #tpu.dot_dimension_numbers<[1], [0], [0], [1], [0, 0, 1, 1], [], []>} : vector<32x32xf32>, vector<32x128xf32>, vector<32x128xf32> -> vector<32x128xf32>
    %c0_9 = arith.constant 0 : index
    %c0_10 = arith.constant 0 : index
    %11 = vector.load %arg5[%c0_9, %c0_10] : memref<32x1xf32, #tpu.memory_space<vmem>>, vector<32x1xf32>
    %12 = vector.broadcast %11 : vector<32x1xf32> to vector<32x128xf32>
    %13 = arith.addf %10, %12 : vector<32x128xf32>
    %cst_11 = arith.constant 0.000000e+00 : f32
    %14 = vector.broadcast %cst_11 : f32 to vector<32x128xf32>
    %15 = arith.maximumf %13, %14 : vector<32x128xf32>
    %c0_12 = arith.constant 0 : index
    %c0_13 = arith.constant 0 : index
    %16 = vector.load %arg6[%c0_12, %c0_13] : memref<8x32xf32, #tpu.memory_space<vmem>>, vector<8x32xf32>
    %cst_14 = arith.constant dense<0.000000e+00> : vector<8x128xf32>
    %17 = tpu.matmul %16, %15, %cst_14 {dimension_numbers = #tpu.dot_dimension_numbers<[1], [0], [0], [1], [0, 0, 1, 1], [], []>} : vector<8x32xf32>, vector<32x128xf32>, vector<8x128xf32> -> vector<8x128xf32>
    %c0_15 = arith.constant 0 : index
    %c0_16 = arith.constant 0 : index
    %18 = vector.load %arg7[%c0_15, %c0_16] : memref<8x1xf32, #tpu.memory_space<vmem>>, vector<8x1xf32>
    %19 = vector.broadcast %18 : vector<8x1xf32> to vector<8x128xf32>
    %20 = arith.addf %17, %19 : vector<8x128xf32>
    %21 = math.tanh %20 : vector<8x128xf32>
    %c0_17 = arith.constant 0 : index
    %c0_18 = arith.constant 0 : index
    %22 = vector.load %arg8[%c0_17, %c0_18] : memref<8x128xf32, #tpu.memory_space<vmem>>, vector<8x128xf32>
    tpu.vector_store %arg8[%c0_17, %c0_18], %21 {strides = array<i32>} : memref<8x128xf32, #tpu.memory_space<vmem>>, vector<8x128xf32>,
    return
  }
  func.func @transform_0(%arg0: i32) -> (i32, i32) {
    %c0_i32 = arith.constant 0 : i32
    %c0_i32_0 = arith.constant 0 : i32
    return %arg0, %c0_i32 : i32, i32
  }
  func.func @transform_1(%arg0: i32) -> (i32, i32) {
    %c0_i32 = arith.constant 0 : i32
    %c0_i32_0 = arith.constant 0 : i32
    %c0_i32_1 = arith.constant 0 : i32
    return %c0_i32, %c0_i32_0 : i32, i32
  }
  func.func @transform_2(%arg0: i32) -> (i32, i32) {
    %c0_i32 = arith.constant 0 : i32
    %c0_i32_0 = arith.constant 0 : i32
    %c0_i32_1 = arith.constant 0 : i32
    return %c0_i32, %c0_i32_0 : i32, i32
  }
  func.func @transform_3(%arg0: i32) -> (i32, i32) {
    %c0_i32 = arith.constant 0 : i32
    %c0_i32_0 = arith.constant 0 : i32
    %c0_i32_1 = arith.constant 0 : i32
    return %c0_i32, %c0_i32_0 : i32, i32
  }
  func.func @transform_4(%arg0: i32) -> (i32, i32) {
    %c0_i32 = arith.constant 0 : i32
    %c0_i32_0 = arith.constant 0 : i32
    %c0_i32_1 = arith.constant 0 : i32
    return %c0_i32, %c0_i32_0 : i32, i32
  }
  func.func @transform_5(%arg0: i32) -> (i32, i32) {
    %c0_i32 = arith.constant 0 : i32
    %c0_i32_0 = arith.constant 0 : i32
    %c0_i32_1 = arith.constant 0 : i32
    return %c0_i32, %c0_i32_0 : i32, i32
  }
  func.func @transform_6(%arg0: i32) -> (i32, i32) {
    %c0_i32 = arith.constant 0 : i32
    %c0_i32_0 = arith.constant 0 : i32
    %c0_i32_1 = arith.constant 0 : i32
    return %c0_i32, %c0_i32_0 : i32, i32
  }
  func.func @transform_7(%arg0: i32) -> (i32, i32) {
    %c0_i32 = arith.constant 0 : i32
    %c0_i32_0 = arith.constant 0 : i32
    return %c0_i32, %arg0 : i32, i32
  }
}

</mosaic_0001>

<bundles_post_ra>
// kernel: tpu_custom_call.1
= control target key start
LH: loop header
LB: loop body
LE: loop exit
PB: predicated region body
PF: predicated region fallthrough
CT: control target
= control target key end

     0   :  { %vm70_vm0 = vcmask 130048   ;;  %v627_v3 = vmov 0   ;;  %vm248_vm2 = vcmask 261120   ;;  %v628_v61 = vmov 0.0|0.0   ;;  %s823_s0 = inlined_call_operand.vmem [shape: f32[2,16], index: 0, kind: input, shape index: {}]   ;;  %s824_s1 = inlined_call_operand.vmem [shape: f32[32,16], index: 1, kind: input, shape index: {}]   ;;  %s825_s2 = inlined_call_operand.vmem [shape: f32[32,1], index: 2, kind: input, shape index: {}]   ;;  %s826_s4 = inlined_call_operand.vmem [shape: f32[32,1], index: 4, kind: input, shape index: {}]   ;;  %s827_s6 = inlined_call_operand.vmem [shape: f32[8,1], index: 6, kind: input, shape index: {}]   ;;  %s828_s3 = inlined_call_operand.vmem [shape: f32[32,32], index: 3, kind: input, shape index: {}]   ;;  %s829_s5 = inlined_call_operand.vmem [shape: f32[8,32], index: 5, kind: input, shape index: {}]   ;;  %s830_s7 = inlined_call_operand.vmem [shape: f32[8,2], index: 7, kind: output, shape index: {}]  }
   0x1   :  { %v26_v0 = vld [vmem:[%s823_s0] sm:$0xff]  ;;  %v27_v1 = vld [vmem:[%s823_s0 + $0x8] sm:$0xff]  ;;  %vm679_vm1 = vmpackc.low %vm70_vm0, %vm70_vm0  ;;  %623 = vset.pattern.permute.xlu0 %v627_v3  ;;  %624 = vset.pattern.permute.xlu1 %v627_v3  ;;  %vm629_vm3 = vmmov 0   ;;  %v630_v62 = vmov 0.0  }
   0x2   :  { %v557_v4 = vpack.c.bf16 %v27_v1, %v26_v0  ;;  %v28_v5 = vld [vmem:[%s823_s0 + $0x10] sm:$0xff]  ;;  %v29_v6 = vld [vmem:[%s823_s0 + $0x18] sm:$0xff]  ;;  %v42_v8 = vld [vmem:[%s824_s1] sm:$0xff] }
   0x3   :  { %v563_v7 = vpack.c.bf16 %v29_v6, %v28_v5  ;;  %v30_v9 = vld [vmem:[%s823_s0 + $0x20] sm:$0xff]  ;;  %v31_v10 = vld [vmem:[%s823_s0 + $0x28] sm:$0xff]  ;;  %526 = vmatprep.mubr.msk.f32.mxu0 %vm70_vm0, %v42_v8  ;;  %v48_v12 = vld [vmem:[%s825_s2 + $0x10] sm:$0xff] }
   0x4   :  { %559 = vmatprep.subr.msk.bf16.mxu0 %vm679_vm1, %v557_v4  ;;  %v46_v11 = vld [vmem:[%s825_s2] sm:$0xff]  ;;  %62 = vperm.xlu1 %624, %v48_v12   ;;  %v569_v13 = vpack.c.bf16 %v31_v10, %v30_v9  ;;  %v47_v14 = vld [vmem:[%s825_s2 + $0x8] sm:$0xff]  ;;  %v49_v15 = vld [vmem:[%s825_s2 + $0x18] sm:$0xff] }
   0x5   :  { %562 = vmatpush3.bf16.xpose.msk.msra.mxu0 %vm679_vm1, %v557_v4  ;;  %52 = vperm.xlu0 %623, %v46_v11   ;;  %v224_v16 = vld [vmem:[%s826_s4] sm:$0xff]  ;;  %v32_v17 = vld [vmem:[%s823_s0 + $0x30] sm:$0xff]  ;;  %v33_v18 = vld [vmem:[%s823_s0 + $0x38] sm:$0xff] }
   0x6   :  { %565 = vmatprep.subr.msk.bf16.mxu0 %vm679_vm1, %v563_v7  ;;  %v225_v19 = vld [vmem:[%s826_s4 + $0x8] sm:$0xff]  ;;  %v575_v20 = vpack.c.bf16 %v33_v18, %v32_v17  ;;  %v226_v21 = vld [vmem:[%s826_s4 + $0x10] sm:$0xff]  ;;  %v227_v22 = vld [vmem:[%s826_s4 + $0x18] sm:$0xff] }
   0x7   :  { %v351_v23 = vld [vmem:[%s827_s6] sm:$0xff]  ;;  %v35_v25 = vld [vmem:[%s823_s0 + $0x48] sm:$0xff]  ;;  %v36_v27 = vld [vmem:[%s823_s0 + $0x50] sm:$0xff] }
   0x8   :  { %67 = vperm.xlu1 %624, %v49_v15   ;;  %v34_v24 = vld [vmem:[%s823_s0 + $0x40] sm:$0xff]  ;;  %v37_v28 = vld [vmem:[%s823_s0 + $0x58] sm:$0xff]  ;;  %v39_v31 = vld [vmem:[%s823_s0 + $0x68] sm:$0xff] }
   0x9   :  { %57 = vperm.xlu0 %623, %v47_v14   ;;  %v581_v26 = vpack.c.bf16 %v35_v25, %v34_v24  ;;  %v587_v29 = vpack.c.bf16 %v37_v28, %v36_v27  ;;  %v38_v30 = vld [vmem:[%s823_s0 + $0x60] sm:$0xff]  ;;  %v40_v33 = vld [vmem:[%s823_s0 + $0x70] sm:$0xff]  ;;  %v41_v34 = vld [vmem:[%s823_s0 + $0x78] sm:$0xff] }
   0xa   :  { %v593_v32 = vpack.c.bf16 %v39_v31, %v38_v30  ;;  %v599_v35 = vpack.c.bf16 %v41_v34, %v40_v33  ;;  %v43_v36 = vld [vmem:[%s824_s1 + $0x8] sm:$0xff]  ;;  %v44_v37 = vld [vmem:[%s824_s1 + $0x10] sm:$0xff]  ;;  %v45_v38 = vld [vmem:[%s824_s1 + $0x18] sm:$0xff] }
   0xb   :  { %v220_v39 = vld [vmem:[%s828_s3] sm:$0xff]  ;;  %v221_v58 = vld [vmem:[%s828_s3 + $0x8] sm:$0xff]  ;;  %v222_v59 = vld [vmem:[%s828_s3 + $0x10] sm:$0xff] }
   0xc   :  { %235 = vperm.xlu1 %624, %v225_v19   ;;  %540 = vmatprep.mubr.msk.f32.mxu1 %vm248_vm2, %v220_v39  ;;  %v223_v60 = vld [vmem:[%s828_s3 + $0x18] sm:$0xff]  ;;  %v350_v17 = vld [vmem:[%s829_s5] sm:$0xff] }
   0xd   :  { %568 = vmatpush3.bf16.xpose.msk.msra.mxu0 %vm679_vm1, %v563_v7  ;;  %230 = vperm.xlu0 %623, %v224_v16  }
   0xe   :  { %571 = vmatprep.subr.msk.bf16.mxu0 %vm679_vm1, %v569_v13 }
  0x10   :  { %245 = vperm.xlu1 %624, %v227_v22  }
  0x11   :  { %240 = vperm.xlu0 %623, %v226_v21  }
  0x15   :  { %574 = vmatpush3.bf16.xpose.msk.msra.mxu0 %vm679_vm1, %v569_v13  ;;  %354 = vperm.xlu0 %623, %v351_v23  }
  0x16   :  { %577 = vmatprep.subr.msk.bf16.mxu0 %vm679_vm1, %v575_v20 }
  0x1d   :  { %580 = vmatpush3.bf16.xpose.msk.msra.mxu0 %vm679_vm1, %v575_v20 }
  0x1e   :  { %583 = vmatprep.subr.msk.bf16.mxu0 %vm679_vm1, %v581_v26 }
  0x25   :  { %586 = vmatpush3.bf16.xpose.msk.msra.mxu0 %vm679_vm1, %v581_v26 }
  0x26   :  { %589 = vmatprep.subr.msk.bf16.mxu0 %vm679_vm1, %v587_v29 }
  0x2d   :  { %592 = vmatpush3.bf16.xpose.msk.msra.mxu0 %vm679_vm1, %v587_v29 }
  0x2e   :  { %595 = vmatprep.subr.msk.bf16.mxu0 %vm679_vm1, %v593_v32 }
  0x35   :  { %598 = vmatpush3.bf16.xpose.msk.msra.mxu0 %vm679_vm1, %v593_v32 }
  0x36   :  { %601 = vmatprep.subr.msk.bf16.mxu0 %vm679_vm1, %v599_v35 }
  0x3d   :  { %604 = vmatpush3.bf16.xpose.msk.msra.mxu0 %vm679_vm1, %v599_v35 }
  0x44   :  { %527 = vmatmul.mubr.msk.f32.vlgmr.msra.gmra.mrb[0].mxu0 %vm70_vm0, %v43_v36 }
  0x45   :  { %529 = vmatprep.mubr.msk.f32.mxu0 %vm70_vm0, %v44_v37 }
  0x48   :  { %530 = vmatmul.mubr.msk.f32.gmra.mrb[2].mxu0 %vm70_vm0, %v45_v38 }
  0x83   :  { %v63_v41 = vpop.permute.xlu1 %62 }
  0x84   :  { %v53_v40 = vpop.permute.xlu0 %52 }
  0x87   :  { %v68_v48 = vpop.permute.xlu1 %67 }
  0x88   :  { %v58_v42 = vpop.permute.xlu0 %57 }
  0x8b   :  { %v236_v63 = vpop.permute.xlu1 %235 }
  0x8c   :  { %v231_v0 = vpop.permute.xlu0 %230 }
  0x8f   :  { %v246_v6 = vpop.permute.xlu1 %245 }
  0x90   :  { %v241_v9 = vpop.permute.xlu0 %240 }
  0x94   :  { %v355_v18 = vpop.permute.xlu0 %354 }
 0x117   :  { %v528_v43 = vpop.f32.mrb[0].mxu0 }
 0x118   :  { %v203_v44 = vadd.f32 %v528_v43, %v58_v42  ;;  %v197_v45 = vpop.f32.mrb[1].mxu0 }
 0x119   :  { %v198_v46 = vadd.f32 %v197_v45, %v53_v40 }
 0x11a   :  { %v217_v47 = vmax.f32 %v203_v44, 0.0 }
 0x11b   :  { %v216_v49 = vmax.f32 %v198_v46, 0.0  ;;  %v531_v50 = vpop.f32.mrb[2].mxu0 }
 0x11c   :  { %v213_v51 = vadd.f32 %v531_v50, %v68_v48  ;;  %v207_v52 = vpop.f32.mrb[3].mxu0 }
 0x11d   :  { %v208_v53 = vadd.f32 %v207_v52, %v63_v41  ;;  %v605_v54 = vpack.c.bf16 %v217_v47, %v216_v49 }
 0x11e   :  { %v219_v55 = vmax.f32 %v213_v51, 0.0 }
 0x11f   :  { %v218_v56 = vmax.f32 %v208_v53, 0.0  ;;  %606 = vmatprep.subr.bf16.mxu1 %v605_v54 }
 0x120   :  { %608 = vmatpush3.bf16.msra.mxu1 %v605_v54 }
 0x121   :  { %v609_v57 = vpack.c.bf16 %v219_v55, %v218_v56 }
 0x123   :  { %610 = vmatprep.subr.bf16.mxu1 %v609_v57 }
 0x124   :  { %612 = vmatpush3.bf16.msra.mxu1 %v609_v57 }
 0x125   :  { %613 = vmatprep.subr.bf16.mxu1 %v628_v61 }
 0x127   :  { %541 = vmatmul.mubr.msk.f32.vlgmr.msra.gmra.mrb[0].mxu1 %vm248_vm2, %v221_v58 }
 0x128   :  { %543 = vmatprep.mubr.msk.f32.mxu1 %vm248_vm2, %v222_v59 }
 0x12b   :  { %544 = vmatmul.mubr.msk.f32.gmra.mrb[2].mxu1 %vm248_vm2, %v223_v60 }
 0x12c   :  { %554 = vmatprep.mubr.msk.f32.mxu1 %vm629_vm3, %v630_v62 }
 0x1fa   :  { %v542_v1 = vpop.f32.mrb[0].mxu1 }
 0x1fb   :  { %v333_v2 = vadd.f32 %v542_v1, %v236_v63  ;;  %v327_v3 = vpop.f32.mrb[1].mxu1 }
 0x1fc   :  { %v328_v4 = vadd.f32 %v327_v3, %v231_v0 }
 0x1fd   :  { %v347_v5 = vmax.f32 %v333_v2, 0.0 }
 0x1fe   :  { %v346_v7 = vmax.f32 %v328_v4, 0.0  ;;  %v545_v8 = vpop.f32.mrb[2].mxu1 }
 0x1ff   :  { %v343_v10 = vadd.f32 %v545_v8, %v246_v6  ;;  %v337_v11 = vpop.f32.mrb[3].mxu1 }
 0x200   :  { %v614_v12 = vpack.c.bf16 %v347_v5, %v346_v7  ;;  %v338_v13 = vadd.f32 %v337_v11, %v241_v9 }
 0x201   :  { %v349_v14 = vmax.f32 %v343_v10, 0.0 }
 0x202   :  { %v348_v15 = vmax.f32 %v338_v13, 0.0  ;;  %615 = vmatpush3.bf16.msra.mxu1 %v614_v12 }
 0x203   :  { %616 = vmatprep.subr.bf16.mxu1 %v628_v61 }
 0x204   :  { %v617_v16 = vpack.c.bf16 %v349_v14, %v348_v15 }
 0x206   :  { %618 = vmatpush3.bf16.msra.mxu1 %v617_v16 }
 0x209   :  { %555 = vmatmul.mubr.msk.f32.vlgmr.msra.gmra.mrb[4].mxu1 %vm248_vm2, %v350_v17 }
 0x2dc   :  { %v426_v19 = vpop.f32.mrb[4].mxu1 }
 0x2dd   :  { %v427_v20 = vadd.f32 %v426_v19, %v355_v18  ;;  %v556_v21 = vpop.f32.mrb[5].mxu1 }
 0x2df   :  { %625 = vtanh.f32 %v427_v20 }
 0x2e9   :  { %v626_v22 = vpop.eup %625 }
 0x2ea   :  { %431 = vst [vmem:[%s830_s7] sm:$0xff] %v626_v22 }

</bundles_post_ra>
